<compile_context>
chip_gen: v7x
topology: tpu7x:2x2x1
jax: 0.10.0
libtpu: 0.0.40
codegen_flags: <defaults>
</compile_context>

<pallas_src>
import functools

import numpy as np
import jax
import jax.numpy as jnp
from jax.experimental import pallas as pl
from jax.experimental.pallas import tpu as pltpu


# ----------------------------- in-kernel conv core ---------------------------


def _taps_matmul(xp, w, HP, P, G):
    """3x3 'same' conv as 3 accumulating MXU dots on a row-pitched padded image.

    xp: (C, Lp) bf16, interior at [G, G+HP), zero guards / zero pad columns.
    w : (Cout, 9*C) bf16, contraction index = (dy*3 + dx)*C + cin.
    returns (Cout, HP) f32; values at pad-column positions are garbage and must
    be re-zeroed by the caller (single output-side mask multiply).
    """
    C = xp.shape[0]
    acc = None
    for dy in range(3):
        slabs = []
        for dx in range(3):
            start = G + (dy - 1) * P + (dx - 1)
            slabs.append(xp[:, start:start + HP])
        cols = jnp.concatenate(slabs, axis=0)                        # (3C, HP)
        part = jnp.dot(w[:, dy * 3 * C:(dy + 1) * 3 * C], cols,
                       preferred_element_type=jnp.float32)           # (Cout, HP)
        acc = part if acc is None else acc + part
    return acc


def _store_padded(o_ref, interior, G, HP, Lp):
    """Aligned stores: zero guards + lane-aligned interior (starts at G=128)."""
    Cout = interior.shape[0]
    o_ref[:, 0:G] = jnp.zeros((Cout, G), o_ref.dtype)
    o_ref[:, G + HP:Lp] = jnp.zeros((Cout, Lp - G - HP), o_ref.dtype)
    o_ref[:, G:G + HP] = interior


# ----------------------------- Pallas kernels --------------------------------


def _conv_kernel(*refs, H, W, G, relu, n_skips, emit_pool):
    """One 3x3 conv (static or per-sample weights) + fused bias/ReLU/residuals.

    refs = (x (C,Lp), w (Cout,9C), b (Cout,1), mask (1,HP), [pool_mat (HP,9)],
            *skips (Cout,Lp), out (Cout,Lp), [pool_out (Cout,9)])
    """
    P, HP = W + 2, H * (W + 2)
    x_ref, w_ref, b_ref, m_ref = refs[:4]
    idx = 4
    p_ref = None
    if emit_pool:
        p_ref = refs[idx]; idx += 1
    skip_refs = refs[idx:idx + n_skips]; idx += n_skips
    o_ref = refs[idx]; idx += 1
    pool_ref = refs[idx] if emit_pool else None

    Lp = o_ref.shape[-1]
    acc = _taps_matmul(x_ref[...], w_ref[...], HP, P, G) + b_ref[...]
    if relu:
        acc = jnp.maximum(acc, 0.0)
    acc = acc * m_ref[...]                                    # re-zero pad columns
    for s_ref in skip_refs:                                   # fused residual adds
        acc = acc + s_ref[:, G:G + HP].astype(jnp.float32)
    y = acc.astype(o_ref.dtype)

    _store_padded(o_ref, y, G, HP, Lp)
    if emit_pool:
        # AdaptiveAvgPool2d((3,3)) bins for the next CG conv's gating.
        pool_ref[...] = jnp.dot(y, p_ref[...], preferred_element_type=jnp.float32)


def _rb_head_kernel(x_ref, w1_ref, b1_ref, w2_ref, b2_ref, m_ref, p_ref,
                    o_ref, pool_ref, y1_ref, *, H, W, G):
    """Fused conv1 -> ReLU -> conv2 of an RB; y1 stays in VMEM scratch."""
    P, HP = W + 2, H * (W + 2)
    Lp = o_ref.shape[-1]
    C = y1_ref.shape[0]

    a1 = _taps_matmul(x_ref[...], w1_ref[...], HP, P, G) + b1_ref[...]
    a1 = jnp.maximum(a1, 0.0) * m_ref[...]
    # Stage y1 (padded, pitched) in VMEM scratch -- never touches HBM.
    _store_padded(y1_ref, a1.astype(y1_ref.dtype), G, HP, Lp)

    a2 = _taps_matmul(y1_ref[...], w2_ref[...], HP, P, G) + b2_ref[...]
    y2 = (a2 * m_ref[...]).astype(o_ref.dtype)

    _store_padded(o_ref, y2, G, HP, Lp)
    pool_ref[...] = jnp.dot(y2, p_ref[...], preferred_element_type=jnp.float32)


# ----------------------------- pallas_call wrappers --------------------------


def conv_block(x_pf, w, b, outmask, pool_mat, H, W, G, *,
               relu=False, skips=(), emit_pool=False):
    """Single 3x3 conv; w is (Cout,9C) static or (N,Cout,9C) per-sample (CG)."""
    N, C, Lp = x_pf.shape
    per_sample = (w.ndim == 3)
    Cout, K = w.shape[-2], w.shape[-1]
    P, HP = W + 2, H * (W + 2)
    b2 = b.reshape(Cout, 1).astype(jnp.float32)

    kern = functools.partial(_conv_kernel, H=H, W=W, G=G, relu=relu,
                             n_skips=len(skips), emit_pool=emit_pool)
    w_spec = (pl.BlockSpec((None, Cout, K), lambda n: (n, 0, 0)) if per_sample
              else pl.BlockSpec((Cout, K), lambda n: (0, 0)))
    in_specs = [pl.BlockSpec((None, C, Lp), lambda n: (n, 0, 0)),
                w_spec,
                pl.BlockSpec((Cout, 1), lambda n: (0, 0)),
                pl.BlockSpec((1, HP), lambda n: (0, 0))]
    args = [x_pf, w, b2, outmask]
    if emit_pool:
        in_specs.append(pl.BlockSpec((HP, 9), lambda n: (0, 0)))
        args.append(pool_mat)
    for s in skips:
        in_specs.append(pl.BlockSpec((None, Cout, Lp), lambda n: (n, 0, 0)))
        args.append(s)

    out_shape = jax.ShapeDtypeStruct((N, Cout, Lp), jnp.bfloat16)
    out_spec = pl.BlockSpec((None, Cout, Lp), lambda n: (n, 0, 0))
    if emit_pool:
        out_shape = (out_shape, jax.ShapeDtypeStruct((N, Cout, 9), jnp.float32))
        out_spec = (out_spec, pl.BlockSpec((None, Cout, 9), lambda n: (n, 0, 0)))

    return pl.pallas_call(
        kern, out_shape=out_shape, grid=(N,),
        in_specs=in_specs, out_specs=out_spec,
        compiler_params=pltpu.CompilerParams(dimension_semantics=("parallel",)),
    )(*args)


def rb_head(x_pf, w1, b1, w2, b2, outmask, pool_mat, H, W, G):
    """Fused conv1+ReLU+conv2; returns (y2_pf, pool_bins(y2))."""
    N, C, Lp = x_pf.shape
    Cout, K = w1.shape
    P, HP = W + 2, H * (W + 2)
    kern = functools.partial(_rb_head_kernel, H=H, W=W, G=G)
    return pl.pallas_call(
        kern,
        out_shape=(jax.ShapeDtypeStruct((N, Cout, Lp), jnp.bfloat16),
                   jax.ShapeDtypeStruct((N, Cout, 9), jnp.float32)),
        grid=(N,),
        in_specs=[pl.BlockSpec((None, C, Lp), lambda n: (n, 0, 0)),
                  pl.BlockSpec((Cout, K), lambda n: (0, 0)),
                  pl.BlockSpec((Cout, 1), lambda n: (0, 0)),
                  pl.BlockSpec((Cout, K), lambda n: (0, 0)),
                  pl.BlockSpec((Cout, 1), lambda n: (0, 0)),
                  pl.BlockSpec((1, HP), lambda n: (0, 0)),
                  pl.BlockSpec((HP, 9), lambda n: (0, 0))],
        out_specs=(pl.BlockSpec((None, Cout, Lp), lambda n: (n, 0, 0)),
                   pl.BlockSpec((None, Cout, 9), lambda n: (n, 0, 0))),
        scratch_shapes=[pltpu.VMEM((C, Lp), jnp.bfloat16)],
        compiler_params=pltpu.CompilerParams(dimension_semantics=("parallel",)),
    )(x_pf, w1, b1.reshape(Cout, 1).astype(jnp.float32),
      w2, b2.reshape(Cout, 1).astype(jnp.float32), outmask, pool_mat)


# ----------------------------- layout helpers --------------------------------


def _round_up(x, m):
    return ((x + m - 1) // m) * m


def guard_size(W):
    return _round_up(W + 3, 128)          # >= P+1 and lane-aligned (128 for W<=125)


def padded_len(H, W, G):
    return _round_up(2 * G + H * (W + 2), 128)


def make_outmask(H, W):
    """(1, H*P) f32: 1 on real pixels, 0 on pad columns (output-side re-zero)."""
    P = W + 2
    col = np.arange(H * P) % P
    m = ((col >= 1) & (col <= W)).astype(np.float32)
    return jnp.asarray(m[None, :])


def make_pool_mat(H, W):
    """(H*P, 9) bf16: pitched interior -> AdaptiveAvgPool2d((3,3)) PyTorch bins."""
    P = W + 2
    M = np.zeros((H * P, 9), np.float32)
    for i in range(3):
        hs, he = (i * H) // 3, -((-(i + 1) * H) // 3)
        for j in range(3):
            ws, we = (j * W) // 3, -((-(j + 1) * W) // 3)
            inv = 1.0 / ((he - hs) * (we - ws))
            for h in range(hs, he):
                for w_ in range(ws, we):
                    M[h * P + (w_ + 1), 3 * i + j] = inv
    return jnp.asarray(M, dtype=jnp.bfloat16)


def pad_pitched(x_nchw, G):
    """(N,C,H,W) f32 -> (N,C,Lp) bf16 row-pitched padded-flat layout."""
    N, C, H, W = x_nchw.shape
    P = W + 2
    Lp = padded_len(H, W, G)
    xp = jnp.pad(x_nchw, ((0, 0), (0, 0), (0, 0), (1, 1))).reshape(N, C, H * P)
    xp = jnp.pad(xp, ((0, 0), (0, 0), (G, Lp - G - H * P)))
    return xp.astype(jnp.bfloat16)


def unpad_pitched(x_pf, H, W, G):
    N, C, _ = x_pf.shape
    P = W + 2
    y = x_pf[:, :, G:G + H * P].astype(jnp.float32).reshape(N, C, H, P)
    return y[:, :, :, 1:W + 1]


def to_matmul_weight(w):
    """(Cout, Cin, 3, 3) -> (Cout, 9*Cin) bf16, tap-major / channel-minor."""
    Cout, Cin = w.shape[:2]
    return w.transpose(0, 2, 3, 1).reshape(Cout, 9 * Cin).astype(jnp.bfloat16)


# ----------------------------- model blocks ----------------------------------
# res_scale == 1 everywhere in CRAN, so the .mul(res_scale) is omitted.


def cg_dynamic_weight(gl, p):
    """Conv2d_CG gating: pooled bins (N,C,9) -> per-sample weights (N,Cout,9C)."""
    N, C, _ = gl.shape
    w = p["weight"]
    Cout = w.shape[0]
    num_lat = p["ce"].shape[0]
    g = p["ci"].shape[1]

    lat = jax.nn.relu(jnp.einsum("nck,mk->ncm", gl, p["ce"]))        # (N,C,lat)
    gate1 = jnp.einsum("ncm,km->nck", lat, p["gd"])                  # (N,C,9)
    t = lat.reshape(N, C // g, g, num_lat)
    oc = jax.nn.relu(jnp.einsum("nqim,ji->nqjm", t, p["ci"]).reshape(N, Cout, num_lat))
    gate2 = jnp.einsum("nqm,km->nqk", oc, p["gd2"])                  # (N,Cout,9)
    gate = jax.nn.sigmoid(gate1[:, None, :, :] + gate2[:, :, None, :])   # (N,Cout,C,9)
    w_dyn = gate * w.reshape(1, Cout, C, 9)
    return w_dyn.transpose(0, 1, 3, 2).reshape(N, Cout, 9 * C).astype(jnp.bfloat16)


def rb_pf(x_pf, p, outmask, pool_mat, H, W, G):
    # conv1 + ReLU + conv2 fused in one kernel; pool bins of y2 come for free.
    y2, gl_y2 = rb_head(x_pf, p["w1"], p["b1"], p["w2"], p["b2"],
                        outmask, pool_mat, H, W, G)
    w_dyn1 = cg_dynamic_weight(gl_y2, p["cg1"])
    z, gl_z = conv_block(y2, w_dyn1, p["cg1"]["bias"], outmask, pool_mat, H, W, G,
                         relu=True, emit_pool=True)
    w_dyn2 = cg_dynamic_weight(gl_z, p["cg2"])
    # CRAB residual (+y2) and RB residual (+x) fused into the last conv epilogue.
    return conv_block(z, w_dyn2, p["cg2"]["bias"], outmask, pool_mat, H, W, G,
                      skips=(y2, x_pf))


def residual_group(x_nchw, params):
    N, C, H, W = x_nchw.shape
    G = guard_size(W)
    outmask = make_outmask(H, W)
    pool_mat = make_pool_mat(H, W)
    x_pf = pad_pitched(x_nchw, G)
    y = x_pf
    for rbp in params["rbs"]:
        y = rb_pf(y, rbp, outmask, pool_mat, H, W, G)
    out_pf = conv_block(y, params["conv_w"], params["conv_b"],
                        outmask, pool_mat, H, W, G, skips=(x_pf,))   # group residual
    return unpad_pitched(out_pf, H, W, G)


# ----------------------------- param init ------------------------------------


def init_conv(key, cout, cin, k=3, wscale=0.05):
    kw, kb = jax.random.split(key)
    w = jax.random.normal(kw, (cout, cin, k, k), jnp.float32) * wscale
    b = jax.random.normal(kb, (cout,), jnp.float32) * 0.01
    return w, b


def init_cg(key, cout, cin):
    keys = jax.random.split(key, 5)
    w, b = init_conv(keys[0], cout, cin)
    num_lat = 9 // 2 + 1                       # = 5, as in Conv2d_CG
    g = 16 if cin >= 16 else cin
    return dict(
        weight=w, bias=b,
        ce=jax.random.normal(keys[1], (num_lat, 9), jnp.float32) * 0.1,
        gd=jax.random.normal(keys[2], (9, num_lat), jnp.float32) * 0.1,
        gd2=jax.random.normal(keys[3], (9, num_lat), jnp.float32) * 0.1,
        ci=jax.random.normal(keys[4], (cout * g // cin, g), jnp.float32) * 0.1,
    )


def init_residual_group(key, n_feat, n_resblocks):
    keys = iter(jax.random.split(key, n_resblocks * 4 + 1))
    rbs = []
    for _ in range(n_resblocks):
        w1, b1 = init_conv(next(keys), n_feat, n_feat)
        w2, b2 = init_conv(next(keys), n_feat, n_feat)
        rbs.append(dict(
            w1=to_matmul_weight(w1), b1=b1,
            w2=to_matmul_weight(w2), b2=b2,
            cg1=init_cg(next(keys), n_feat, n_feat),
            cg2=init_cg(next(keys), n_feat, n_feat)))
    gw, gb = init_conv(next(keys), n_feat, n_feat)
    return dict(rbs=rbs, conv_w=to_matmul_weight(gw), conv_b=gb)


# ----------------------------- main -------------------------------------------

if __name__ == "__main__":
    n_feat, n_resblocks = 16, 2
    N, H, W = 2, 16, 16

    key = jax.random.PRNGKey(0)
    kx, kp, kc = jax.random.split(key, 3)
    x = jax.random.normal(kx, (N, n_feat, H, W), jnp.float32)
    params = init_residual_group(kp, n_feat, n_resblocks)

    G = guard_size(W)
    outmask = make_outmask(H, W)
    pool_mat = make_pool_mat(H, W)

    # Light correctness check of the Pallas conv against XLA conv (bf16 inputs).
    w0, b0 = init_conv(kc, n_feat, n_feat)
    xb = x.astype(jnp.bfloat16).astype(jnp.float32)
    wb = w0.astype(jnp.bfloat16).astype(jnp.float32)
    ref = jax.lax.conv_general_dilated(
        xb, wb, window_strides=(1, 1), padding="SAME",
        dimension_numbers=("NCHW", "OIHW", "NCHW"),
        precision=jax.lax.Precision.HIGHEST) + b0[None, :, None, None]
    got_pf = conv_block(pad_pitched(x, G), to_matmul_weight(w0), b0,
                        outmask, pool_mat, H, W, G)
    got = unpad_pitched(got_pf, H, W, G)
    assert float(jnp.max(jnp.abs(got - ref))) < 3e-2, "pallas conv mismatch"

    fwd = jax.jit(residual_group)
    out = jax.block_until_ready(fwd(x, params))

    assert out.shape == (N, n_feat, H, W), out.shape
    assert bool(jnp.all(jnp.isfinite(out)))
    print("KERNEL_OK")
</pallas_src>

<mosaic_0001>
module attributes {stable_mosaic.version = 11 : i64} {
  func.func @_conv_kernel(%arg0: i32, %arg1: memref<1x16x640xbf16, #tpu.memory_space<vmem>>, %arg2: memref<16x144xbf16, #tpu.memory_space<vmem>>, %arg3: memref<16x1xf32, #tpu.memory_space<vmem>>, %arg4: memref<1x288xf32, #tpu.memory_space<vmem>>, %arg5: memref<1x16x640xbf16, #tpu.memory_space<vmem>>) attributes {dimension_semantics = [#tpu.dimension_semantics<parallel>], iteration_bounds = array<i64: 2>, scalar_prefetch = 0 : i64, scratch_operands = 0 : i64, tpu.core_type = #tpu.core_type<tc>, window_params = [{transform_indices = @transform_0, window_bounds = array<i64: 1, 16, 640>}, {pipeline_mode = #tpu.pipeline_mode<synchronous>, transform_indices = @transform_1, window_bounds = array<i64: 16, 144>}, {pipeline_mode = #tpu.pipeline_mode<synchronous>, transform_indices = @transform_2, window_bounds = array<i64: 16, 1>}, {pipeline_mode = #tpu.pipeline_mode<synchronous>, transform_indices = @transform_3, window_bounds = array<i64: 1, 288>}, {transform_indices = @transform_4, window_bounds = array<i64: 1, 16, 640>}]} {
    %c0 = arith.constant 0 : index
    %c0_0 = arith.constant 0 : index
    %c0_1 = arith.constant 0 : index
    %0 = vector.load %arg1[%c0, %c0_0, %c0_1] : memref<1x16x640xbf16, #tpu.memory_space<vmem>>, vector<1x16x640xbf16>
    %1 = vector.shape_cast %0 : vector<1x16x640xbf16> to vector<16x640xbf16>
    %c0_2 = arith.constant 0 : index
    %c0_3 = arith.constant 0 : index
    %2 = vector.load %arg2[%c0_2, %c0_3] : memref<16x144xbf16, #tpu.memory_space<vmem>>, vector<16x144xbf16>
    %3 = vector.extract_strided_slice %1 {offsets = [0, 109], sizes = [16, 288], strides = [1, 1]} : vector<16x640xbf16> to vector<16x288xbf16>
    %4 = vector.extract_strided_slice %1 {offsets = [0, 110], sizes = [16, 288], strides = [1, 1]} : vector<16x640xbf16> to vector<16x288xbf16>
    %5 = vector.extract_strided_slice %1 {offsets = [0, 111], sizes = [16, 288], strides = [1, 1]} : vector<16x640xbf16> to vector<16x288xbf16>
    %6 = tpu.concatenate %3, %4, %5 in 0 : vector<16x288xbf16>, vector<16x288xbf16>, vector<16x288xbf16> -> vector<48x288xbf16>
    %7 = vector.extract_strided_slice %2 {offsets = [0, 0], sizes = [16, 48], strides = [1, 1]} : vector<16x144xbf16> to vector<16x48xbf16>
    %cst = arith.constant dense<0.000000e+00> : vector<16x288xf32>
    %8 = tpu.matmul %7, %6, %cst {dimension_numbers = #tpu.dot_dimension_numbers<[1], [0], [0], [1], [0, 0, 1, 1], [], []>} : vector<16x48xbf16>, vector<48x288xbf16>, vector<16x288xf32> -> vector<16x288xf32>
    %9 = vector.extract_strided_slice %1 {offsets = [0, 127], sizes = [16, 288], strides = [1, 1]} : vector<16x640xbf16> to vector<16x288xbf16>
    %10 = vector.extract_strided_slice %1 {offsets = [0, 128], sizes = [16, 288], strides = [1, 1]} : vector<16x640xbf16> to vector<16x288xbf16>
    %11 = vector.extract_strided_slice %1 {offsets = [0, 129], sizes = [16, 288], strides = [1, 1]} : vector<16x640xbf16> to vector<16x288xbf16>
    %12 = tpu.concatenate %9, %10, %11 in 0 : vector<16x288xbf16>, vector<16x288xbf16>, vector<16x288xbf16> -> vector<48x288xbf16>
    %13 = vector.extract_strided_slice %2 {offsets = [0, 48], sizes = [16, 48], strides = [1, 1]} : vector<16x144xbf16> to vector<16x48xbf16>
    %cst_4 = arith.constant dense<0.000000e+00> : vector<16x288xf32>
    %14 = tpu.matmul %13, %12, %cst_4 {dimension_numbers = #tpu.dot_dimension_numbers<[1], [0], [0], [1], [0, 0, 1, 1], [], []>} : vector<16x48xbf16>, vector<48x288xbf16>, vector<16x288xf32> -> vector<16x288xf32>
    %15 = arith.addf %8, %14 : vector<16x288xf32>
    %16 = vector.extract_strided_slice %1 {offsets = [0, 145], sizes = [16, 288], strides = [1, 1]} : vector<16x640xbf16> to vector<16x288xbf16>
    %17 = vector.extract_strided_slice %1 {offsets = [0, 146], sizes = [16, 288], strides = [1, 1]} : vector<16x640xbf16> to vector<16x288xbf16>
    %18 = vector.extract_strided_slice %1 {offsets = [0, 147], sizes = [16, 288], strides = [1, 1]} : vector<16x640xbf16> to vector<16x288xbf16>
    %19 = tpu.concatenate %16, %17, %18 in 0 : vector<16x288xbf16>, vector<16x288xbf16>, vector<16x288xbf16> -> vector<48x288xbf16>
    %20 = vector.extract_strided_slice %2 {offsets = [0, 96], sizes = [16, 48], strides = [1, 1]} : vector<16x144xbf16> to vector<16x48xbf16>
    %cst_5 = arith.constant dense<0.000000e+00> : vector<16x288xf32>
    %21 = tpu.matmul %20, %19, %cst_5 {dimension_numbers = #tpu.dot_dimension_numbers<[1], [0], [0], [1], [0, 0, 1, 1], [], []>} : vector<16x48xbf16>, vector<48x288xbf16>, vector<16x288xf32> -> vector<16x288xf32>
    %22 = arith.addf %15, %21 : vector<16x288xf32>
    %c0_6 = arith.constant 0 : index
    %c0_7 = arith.constant 0 : index
    %23 = vector.load %arg3[%c0_6, %c0_7] : memref<16x1xf32, #tpu.memory_space<vmem>>, vector<16x1xf32>
    %24 = vector.broadcast %23 : vector<16x1xf32> to vector<16x288xf32>
    %25 = arith.addf %22, %24 : vector<16x288xf32>
    %c0_8 = arith.constant 0 : index
    %c0_9 = arith.constant 0 : index
    %26 = vector.load %arg4[%c0_8, %c0_9] : memref<1x288xf32, #tpu.memory_space<vmem>>, vector<1x288xf32>
    %27 = vector.broadcast %26 : vector<1x288xf32> to vector<16x288xf32>
    %28 = arith.mulf %25, %27 : vector<16x288xf32>
    %29 = arith.truncf %28 : vector<16x288xf32> to vector<16x288xbf16>
    %cst_10 = arith.constant 0.000000e+00 : bf16
    %30 = vector.broadcast %cst_10 : bf16 to vector<16x128xbf16>
    %c0_11 = arith.constant 0 : index
    %c0_12 = arith.constant 0 : index
    %c0_13 = arith.constant 0 : index
    %31 = vector.load %arg5[%c0_11, %c0_12, %c0_13] : memref<1x16x640xbf16, #tpu.memory_space<vmem>>, vector<1x16x128xbf16>
    %32 = vector.shape_cast %31 : vector<1x16x128xbf16> to vector<16x128xbf16>
    %33 = vector.shape_cast %30 : vector<16x128xbf16> to vector<1x16x128xbf16>
    tpu.vector_store %arg5[%c0_11, %c0_12, %c0_13], %33 {strides = array<i32>} : memref<1x16x640xbf16, #tpu.memory_space<vmem>>, vector<1x16x128xbf16>,
    %cst_14 = arith.constant 0.000000e+00 : bf16
    %34 = vector.broadcast %cst_14 : bf16 to vector<16x224xbf16>
    %c0_15 = arith.constant 0 : index
    %c0_16 = arith.constant 0 : index
    %c416 = arith.constant 416 : index
    %35 = vector.load %arg5[%c0_15, %c0_16, %c416] : memref<1x16x640xbf16, #tpu.memory_space<vmem>>, vector<1x16x224xbf16>
    %36 = vector.shape_cast %35 : vector<1x16x224xbf16> to vector<16x224xbf16>
    %37 = vector.shape_cast %34 : vector<16x224xbf16> to vector<1x16x224xbf16>
    tpu.vector_store %arg5[%c0_15, %c0_16, %c416], %37 {strides = array<i32>} : memref<1x16x640xbf16, #tpu.memory_space<vmem>>, vector<1x16x224xbf16>,
    %c0_17 = arith.constant 0 : index
    %c0_18 = arith.constant 0 : index
    %c128 = arith.constant 128 : index
    %38 = vector.load %arg5[%c0_17, %c0_18, %c128] : memref<1x16x640xbf16, #tpu.memory_space<vmem>>, vector<1x16x288xbf16>
    %39 = vector.shape_cast %38 : vector<1x16x288xbf16> to vector<16x288xbf16>
    %40 = vector.shape_cast %29 : vector<16x288xbf16> to vector<1x16x288xbf16>
    tpu.vector_store %arg5[%c0_17, %c0_18, %c128], %40 {strides = array<i32>} : memref<1x16x640xbf16, #tpu.memory_space<vmem>>, vector<1x16x288xbf16>,
    return
  }
  func.func @transform_0(%arg0: i32) -> (i32, i32, i32) {
    %c0_i32 = arith.constant 0 : i32
    %c0_i32_0 = arith.constant 0 : i32
    %c0_i32_1 = arith.constant 0 : i32
    return %arg0, %c0_i32, %c0_i32_0 : i32, i32, i32
  }
  func.func @transform_1(%arg0: i32) -> (i32, i32) {
    %c0_i32 = arith.constant 0 : i32
    %c0_i32_0 = arith.constant 0 : i32
    %c0_i32_1 = arith.constant 0 : i32
    return %c0_i32, %c0_i32_0 : i32, i32
  }
  func.func @transform_2(%arg0: i32) -> (i32, i32) {
    %c0_i32 = arith.constant 0 : i32
    %c0_i32_0 = arith.constant 0 : i32
    %c0_i32_1 = arith.constant 0 : i32
    return %c0_i32, %c0_i32_0 : i32, i32
  }
  func.func @transform_3(%arg0: i32) -> (i32, i32) {
    %c0_i32 = arith.constant 0 : i32
    %c0_i32_0 = arith.constant 0 : i32
    %c0_i32_1 = arith.constant 0 : i32
    return %c0_i32, %c0_i32_0 : i32, i32
  }
  func.func @transform_4(%arg0: i32) -> (i32, i32, i32) {
    %c0_i32 = arith.constant 0 : i32
    %c0_i32_0 = arith.constant 0 : i32
    %c0_i32_1 = arith.constant 0 : i32
    return %arg0, %c0_i32, %c0_i32_0 : i32, i32, i32
  }
}

</mosaic_0001>

<bundles_post_ra>
// kernel: tpu_custom_call.1
= control target key start
LH: loop header
LB: loop body
LE: loop exit
PB: predicated region body
PF: predicated region fallthrough
CT: control target
= control target key end

     0   :  { %9 = vsyncpa [#allocation3], 0  ;;  %s1433_s0 = inlined_call_operand.hbm [shape: bf16[2,16,640], index: 0, kind: input, shape index: {}]   ;;  %s1434_s1 = inlined_call_operand.vmem [shape: bf16[16,144], index: 1, kind: input, shape index: {}]   ;;  %s1435_s2 = inlined_call_operand.vmem [shape: f32[16,1], index: 2, kind: input, shape index: {}]   ;;  %s1436_s3 = inlined_call_operand.vmem [shape: f32[1,288], index: 3, kind: input, shape index: {}]   ;;  %s1437_s4 = inlined_call_operand.hbm [shape: bf16[2,16,640], index: 4, kind: output, shape index: {}]  }
   0x1   :  { %11 = vsyncpa [#allocation3 + $0x1], 0 }
   0x2   :  { %12 = vsyncpa [#allocation4], 0 }
   0x3   :  { %14 = vsyncpa [#allocation4 + $0x1], 0  ;;  %s1125_s15 = smov 0   ;;  %s1127_s16 = smov 0  }
   0x4   :  { %s1129_s17 = smov 0   ;;  %s1131_s18 = smov 0  }
   0x5 LB: > { %s1146_s19 = sadd.s32 4294967295, %s1080_s18   ;;  %s829_s20 = sadd.s32 4294967294, %s1080_s18   ;;  %s1080_s18 = sphi %s1131_s18, %s1449_s18   ;;  %s1076_s17 = sphi %s1129_s17, %s1448_s17   ;;  %s1072_s16 = sphi %s1127_s16, %s1447_s16   ;;  %s1068_s15 = sphi %s1125_s15, %s1446_s15  }
   0x6   : > { %s1150_s21 = sadd.s32 1, %s1080_s18   ;;  %s27_s22 = sadd.s32 1, %s1076_s17 }
   0x7   : > { %s24_s23 = ssub.s32 %s1080_s18, %s1150_s21  ;;  %p34_p0 = scmp.ne.s32.totalorder %s1076_s17, %s1072_s16 }
   0x8   : > { %p25_p1 = scmp.eq.s32.totalorder %s24_s23, 0  ;;  %p35_p2 = scmp.eq.s32.totalorder %s1080_s18, 0 }
   0x9   : > { %p40_p3 = scmp.ne.s32.totalorder %s1072_s16, %s1068_s15  ;;  %p41_p4 = scmp.eq.s32.totalorder %s1146_s19, 0 }
   0xa   : > { %s1162_s24 = scalar_select %p25_p1, %s1076_s17, %s27_s22  }
   0xb   : > { %p36_p5 = por %p35_p2, %p34_p0  ;;  %p1164_p6 = por %p41_p4, %p40_p3 }
   0xc   : > { %p127_p7 = scmp.eq.s32.totalorder %s1146_s19, 1  ;;  %p133_p8 = scmp.eq.s32.totalorder %s829_s20, 1 }
   0xd   : > { %p923_p10 = scmp.lt.s32.totalorder %s1080_s18, 2  ;;  %s162_s28 = sand.u32 1, %s1076_s17  }
   0xe   : > { %p1171_p11 = por %p127_p7, %p34_p0  ;;  %p1175_p12 = por %p133_p8, %p40_p3 }
   0xf   : > { %s908_s29 = smul.u32 640, %s1080_s18  ;;  %p1186_p13 = pnand %p923_p10, %p36_p5 }
  0x10   : > { %s1440_s26 = scalar_select %p1171_p11, 1, 0 }
  0x11   : > { %s1441_s27 = scalar_select %p1175_p12, 1, 0 }
  0x12   : > { %s907_s30 = smul.u32 40, %s162_s28  ;;  %s1184_s7 = scalar_lea.hbm %s1433_s0, %s908_s29 }
  0x13   : > { %s1192_s11 = scalar_lea.sflag [#allocation3], %s162_s28  ;;  %s984_s12 = scalar_lea.hbm %s1184_s7, 640 }
  0x14   : > { %s166_s9 = scalar_lea.vmem [#allocation2], %s907_s30  ;;  %p985_p0 = scmp.ne.s32.totalorder %s1184_s7, %s984_s12 }
  0x15   : > { %s173_s10 = sshll.u32 %s166_s9, 4  ;;  %p986_p1 = pneg %p1186_p13  ;;  %s1190_s10 = int_to_ptr.vmem [resolvable:$true] %s173_s10 }
  0x16   : > { %s989_s20 = scalar_lea.hbm %s1433_s0, 1280  ;;  %p990_p4 = scmp.lt.u32.totalorder %s1184_s7, %s1433_s0 }
  0x17   : > { %p987_p2 = pnand %p986_p1, %p985_p0  ;;  %p991_p5 = scmp.lt.u32.totalorder %s989_s20, %s984_s12 }
  0x18   : > { %p993_p8 = scmp.lt.u32.totalorder %s984_s12, %s1184_s7 }
  0x19   : > { %p988_p3 = pneg %p987_p2  ;;  %p992_p7 = por %p991_p5, %p990_p4 }
  0x1b   : > { %p994_p10 = por %p993_p8, %p992_p7 }
  0x1d   : > { %p995_p9 = pnand %p994_p10, %p988_p3 }
  0x1f   : > { %998 = shalt.err (!%p995_p9)
}
  0x20   : > { %s999_s28 = scalar_lea.vmem %s1190_s10, 640  ;;  %s1082_s29 = smov [#allocation2]  }
  0x21   : > { %p1000_p0 = scmp.ne.s32.totalorder %s1190_s10, %s999_s28  ;;  %s1004_s30 = sshll.u32 %s1082_s29, 4  ;;  %s1005_s30 = int_to_ptr.vmem [resolvable:$false] %s1004_s30 }
  0x22   : > { %s1006_s5 = scalar_lea.vmem %s1005_s30, 1280  ;;  %p1007_p11 = scmp.lt.s32.totalorder %s1190_s10, %s1005_s30 }
  0x23   : > { %p1002_p2 = pnand %p1000_p0, %p986_p1  ;;  %p1008_p4 = scmp.lt.s32.totalorder %s1006_s5, %s999_s28 }
  0x25   : > { %p1003_p12 = pneg %p1002_p2  ;;  %p1009_p5 = por %p1008_p4, %p1007_p11 }
  0x27   : > { %p1010_p7 = pnand %p1009_p5, %p1003_p12 }
  0x29   : > { %1013 = shalt.err (!%p1010_p7)
}
  0x2a   : > { %s1083_s6 = smov 320   ;;  %s1084_s9 = smov 20  }
  0x2b   : > { %918 = dma.hbm_to_vmem [thread:$0]  (!%p1186_p13), %s1184_s7, 640, %s1190_s10, %s1192_s11, %s1083_s6, %s1083_s6, %s1084_s9  }
  0x2c   : > { %p833_p9 = scmp.ge.s32.totalorder %s1080_s18, 1  ;;  %p181_p1 = scmp.lt.s32.totalorder %s1080_s18, 3 }
  0x2e   : > { %p182_p3 = pnand %p833_p9, %p181_p1 }
  0x2f   : > { %s1223_s12 = sand.u32 (!%p182_p3), 1, %s1072_s16  }
  0x30   : > { %185 = sbr.rel (%p182_p3) target bundleno = 573 (0x23d), region = 36  ;;  %s188_s14 = scalar_lea.sflag (!%p182_p3), [#allocation3], %s1223_s12 }
  0x31   : > { %s909_s13 = smul.u32 (!%p182_p3), 40, %s1223_s12 }
  0x33   : > { %s191_s20 = scalar_lea.vmem (!%p182_p3), [#allocation2], %s909_s13 }
  0x37   : > { %1059 = dma.done.wait (%p1164_p6), %s188_s14, 640  }
  0x38   : > { %1061 = vsyncadd (%p1164_p6), %s188_s14, 4294966656  ;;  %v1233_v0 = vld [vmem:[%s191_s20 + $0xc] ss:$20 sps:$4 sm:$0xff]   ;;  %v1235_v1 = vld [vmem:[%s191_s20 + $0x4] ss:$20 sps:$4 sm:$0xff]   ;;  %s1085_s7 = smov 127  }
  0x39   : > { %245 = vrot.lane.b32.xlu1 %v1233_v0, %s1085_s7  ;;  %241 = vrot.lane.b32.xlu0 %v1235_v1, %s1085_s7  ;;  %v1239_v2 = vld [vmem:[%s191_s20 + $0x8] ss:$20 sps:$4 sm:$0xff]   ;;  %s1086_s8 = smov 126   ;;  %v980_v3 = vld [vmem:[%s191_s20] ss:$20 sps:$4 sm:$0xff]   ;;  %s1087_s25 = smov 1  }
  0x3a   : > { %s1088_s10 = smov 19   ;;  %v1257_v4 = vld [vmem:[%s1434_s1] ss:$8 sps:$4 sm:$0xff]   ;;  %s1089_s23 = smov 80   ;;  %v1091_v5 = vmov 0.0   ;;  %vm247_vm0 = vcmask 1039360  }
  0x3b   : > { %s1090_s28 = smov 111   ;;  %869 = vmatprep.subr.bf16.mxu1 %v1091_v5  ;;  %vm1092_vm1 = vmmov 0   ;;  %vm259_vm2 = vcmask 1031168   ;;  %v1093_v15 = vmov 0   ;;  %vm294_vm3 = vcmask 7168   ;;  %s1094_s29 = smov 110  }
  0x3c   : > { %875 = vmatprep.mubr.msk.bf16.mxu1 %vm1092_vm1, %v1091_v5  ;;  %349 = vmatprep.mubr.bf16.mxu0 %v1093_v15  ;;  %s1095_s30 = smov 109   ;;  %v983_v28 = vld [vmem:[%s1434_s1 + $0x4] ss:$8 sps:$4 sm:$0xff]   ;;  %s1096_s9 = smov 32   ;;  %vm425_vm4 = vcmask 154624   ;;  %vm313_vm5 = vcmask 392192  }
  0x3d   : > { %253 = vrot.lane.b32.xlu1 %v1235_v1, %s1086_s8  ;;  %243 = vrot.lane.b32.xlu0 %v1239_v2, %s1085_s7  ;;  %v669_v29 = vld [vmem:[%s1435_s2] sm:$0xff]  ;;  %v670_v30 = vld [vmem:[%s1435_s2 + $0x8] sm:$0xff]  ;;  %vm537_vm6 = vcmask 908288   ;;  %vm549_vm7 = vcmask 900096   ;;  %vm561_vm8 = vcmask 891904   ;;  %vm574_vm9 = vcmask 261120  }
  0x3e   : > { %973 = vset.pattern.permute.xlu0 %v1093_v15  ;;  %974 = vset.pattern.permute.xlu1 %v1093_v15  ;;  %vm715_vm10 = vcmask 1043712   ;;  %vm716_vm11 = vcmask 1047556   ;;  %s910_s11 = smul.u32 640, %s1146_s19  ;;  %vm738_vm13 = vcmask 257024   ;;  %s743_s19 = scalar_lea.sflag [#allocation4], %s1223_s12 }
  0x3f   : > { %vm717_vm12 = vmor %vm716_vm11, %vm715_vm10  ;;  %p1443_p11 = scmp.ne.s32.totalorder %s1440_s26, 0  ;;  %s1097_s5 = smov [#allocation5]  }
  0x40   : > { %s1018_s6 = sshll.u32 %s1097_s5, 4  ;;  %s1019_s6 = int_to_ptr.vmem [resolvable:$false] %s1018_s6 }
  0x41   : > { %257 = vrot.lane.b32.xlu1 %v1233_v0, %s1086_s8  ;;  %255 = vrot.lane.b32.xlu0 %v1239_v2, %s1086_s8 }
  0x45   : > { %251 = vrot.lane.b32.xlu1 %v980_v3, %s1086_s8  ;;  %239 = vrot.lane.b32.xlu0 %v980_v3, %s1085_s7 }
  0x49   : > { %274 = vrot.lane.b32.xlu1 %v1239_v2, %s1087_s25  ;;  %272 = vrot.lane.b32.xlu0 %v1235_v1, %s1087_s25 }
  0x4d   : > { %270 = vrot.lane.b32.xlu1 %v980_v3, %s1087_s25  ;;  %276 = vrot.lane.b32.xlu0 %v1233_v0, %s1087_s25 }
  0x51   : > { %405 = vrot.lane.b32.xlu1 %v1239_v2, %s1088_s10  ;;  %403 = vrot.lane.b32.xlu0 %v1235_v1, %s1088_s10 }
  0x55   : > { %268 = vrot.lane.b32.xlu1 %v1257_v4, %s1089_s23  ;;  %407 = vrot.lane.b32.xlu0 %v1233_v0, %s1088_s10 }
  0x59   : > { %533 = vrot.lane.b32.xlu1 %v1239_v2, %s1090_s28  ;;  %401 = vrot.lane.b32.xlu0 %v980_v3, %s1088_s10 }
  0x5d   : > { %535 = vrot.lane.b32.xlu0 %v1233_v0, %s1090_s28 }
  0xab   : > { %v246_v6 = vpop.permute.xlu1 %245  ;;  %v242_v7 = vpop.permute.xlu0 %241 }
  0xac   : > { %284 = vrot.lane.b32.xlu0 %v246_v6, %s1087_s25  ;;  %278 = vrot.lane.b32.xlu1 %v242_v7, %s1087_s25 }
  0xaf   : > { %v254_v8 = vpop.permute.xlu1 %253  ;;  %v244_v9 = vpop.permute.xlu0 %243 }
  0xb0   : > { %286 = vrot.lane.b32.xlu1 %v254_v8, %s1087_s25  ;;  %v249_v13 = vsel %vm247_vm0, %v242_v7, %v244_v9  ;;  %v250_v18 = vsel %vm247_vm0, %v244_v9, %v246_v6 }
  0xb3   : > { %v258_v10 = vpop.permute.xlu1 %257  ;;  %v256_v11 = vpop.permute.xlu0 %255 }
  0xb4   : > { %292 = vrot.lane.b32.xlu0 %v258_v10, %s1087_s25  ;;  %415 = vrot.lane.b32.xlu1 %v246_v6, %s1088_s10  ;;  %v261_v16 = vsel %vm259_vm2, %v254_v8, %v256_v11  ;;  %v262_v22 = vsel %vm259_vm2, %v256_v11, %v258_v10 }
  0xb7   : > { %v252_v12 = vpop.permute.xlu1 %251  ;;  %v240_v14 = vpop.permute.xlu0 %239 }
  0xb8   : > { %280 = vrot.lane.b32.xlu0 %v249_v13, %s1087_s25  ;;  %423 = vrot.lane.b32.xlu1 %v258_v10, %s1088_s10  ;;  %v248_v26 = vsel %vm247_vm0, %v240_v14, %v242_v7  ;;  %v260_v27 = vsel %vm259_vm2, %v252_v12, %v254_v8 }
  0xbb   : > { %v275_v17 = vpop.permute.xlu1 %274  ;;  %v273_v19 = vpop.permute.xlu0 %272 }
  0xbc   : > { %288 = vrot.lane.b32.xlu0 %v261_v16, %s1087_s25  ;;  %282 = vrot.lane.b32.xlu1 %v250_v18, %s1087_s25  ;;  %v296_v20 = vsel %vm294_vm3, %v273_v19, %v275_v17 }
  0xbd   : > { %317 = vmatprep.subr.bf16.mxu0 %v296_v20 }
  0xbf   : > { %v271_v21 = vpop.permute.xlu1 %270  ;;  %v277_v23 = vpop.permute.xlu0 %276 }
  0xc0   : > { %413 = vrot.lane.b32.xlu0 %v250_v18, %s1088_s10  ;;  %v295_v24 = vsel %vm294_vm3, %v271_v21, %v273_v19  ;;  %290 = vrot.lane.b32.xlu1 %v262_v22, %s1087_s25  ;;  %v297_v25 = vsel %vm294_vm3, %v275_v17, %v277_v23  ;;  %s1365_s25 = scalar_lea.vmem [#allocation5], %s909_s13 }
  0xc1   : > { %318 = vmatpush1.bf16.msra.mxu0 %v295_v24  ;;  %870 = vmatpush3.bf16.msra.mxu1 %v297_v25  ;;  %713 = vst [vmem:[%s1365_s25] sm:$0xf] %v1093_v15  ;;  %714 = vst [vmem:[%s1365_s25 + $0x14] sm:$0xf] %v1093_v15  ;;  %s756_s22 = sshll.u32 %s1365_s25, 4  ;;  %s1386_s22 = int_to_ptr.vmem [resolvable:$true] %s756_s22 }
  0xc2   : > { %871 = vmatprep.subr.bf16.mxu1 %v1091_v5  ;;  %718 = vst.msk [vmem:[%s1365_s25 + $0xc] sm:$0xff] %vm717_vm12, %v1093_v15  ;;  %719 = vst.msk [vmem:[%s1365_s25 + $0x20] sm:$0xff] %vm717_vm12, %v1093_v15  ;;  %p1021_p8 = scmp.lt.s32.totalorder %s1386_s22, %s1019_s6 }
  0xc3   : > { %v404_v31 = vpop.permute.xlu0 %403  ;;  %v406_v32 = vpop.permute.xlu1 %405 }
  0xc4   : > { %409 = vrot.lane.b32.xlu0 %v248_v26, %s1088_s10  ;;  %531 = vrot.lane.b32.xlu1 %v1235_v1, %s1090_s28  ;;  %v427_v55 = vsel %vm425_vm4, %v404_v31, %v406_v32 }
  0xc7   : > { %v408_v33 = vpop.permute.xlu0 %407  ;;  %v269_v34 = vpop.permute.xlu1 %268 }
  0xc8   : > { %421 = vrot.lane.b32.xlu0 %v262_v22, %s1088_s10  ;;  %411 = vrot.lane.b32.xlu1 %v249_v13, %s1088_s10  ;;  %v428_v58 = vsel %vm425_vm4, %v406_v32, %v408_v33 }
  0xcb   : > { %v402_v35 = vpop.permute.xlu0 %401  ;;  %v1319_v36 = vpop.permute.xlu1 %533 }
  0xcc   : > { %417 = vrot.lane.b32.xlu0 %v260_v27, %s1088_s10  ;;  %419 = vrot.lane.b32.xlu1 %v261_v16, %s1088_s10  ;;  %v426_v59 = vsel %vm425_vm4, %v402_v35, %v404_v31  ;;  %v689_v27 = vlaneseq  ;;  %v687_v35 = vld [vmem:[%s1436_s3] sm:$0x7] }
  0xce   : > { %v690_v33 = vshrl.u32 %v689_v27, 7 }
  0xcf   : > { %v1321_v37 = vpop.permute.xlu0 %535 }
  0xd0   : > { %545 = vrot.lane.b32.xlu0 %v1239_v2, %s1094_s29  ;;  %547 = vrot.lane.b32.xlu1 %v1233_v0, %s1094_s29  ;;  %v539_v8 = vsel %vm537_vm6, %v1319_v36, %v1321_v37 }
  0xd4   : > { %543 = vrot.lane.b32.xlu0 %v1235_v1, %s1094_s29  ;;  %557 = vrot.lane.b32.xlu1 %v1239_v2, %s1095_s30  ;;  %s1384_s29 = scalar_lea.hbm %s1437_s4, %s910_s11 }
  0xd8   : > { %559 = vrot.lane.b32.xlu0 %v1233_v0, %s1095_s30  ;;  %555 = vrot.lane.b32.xlu1 %v1235_v1, %s1095_s30  ;;  %s1014_s30 = scalar_lea.vmem %s1386_s22, 640 }
  0xd9   : > { %p1015_p6 = scmp.ne.s32.totalorder %s1386_s22, %s1014_s30 }
  0xdb   : > { %p1016_p12 = pnand %p1015_p6, %p1443_p11 }
  0xdc   : > { %570 = vrot.lane.b32.xlu0 %v1257_v4, %s1096_s9  ;;  %572 = vrot.lane.b32.xlu1 %v983_v28, %s1096_s9  ;;  %s1020_s9 = scalar_lea.vmem %s1019_s6, 1280 }
  0xdd   : > { %p1017_p13 = pneg %p1016_p12  ;;  %p1022_p10 = scmp.lt.s32.totalorder %s1020_s9, %s1014_s30 }
  0xdf   : > { %p1023_p0 = por %p1022_p10, %p1021_p8 }
  0xe0   : > { %673 = vperm.xlu0 %973, %v669_v29   ;;  %678 = vperm.xlu1 %974, %v670_v30  }
  0xe1   : > { %p1024_p2 = pnand %p1023_p0, %p1017_p13 }
 0x11e   : > { %v279_v38 = vpop.permute.xlu1 %278  ;;  %v285_v39 = vpop.permute.xlu0 %284 }
 0x122   : > { %v287_v40 = vpop.permute.xlu1 %286 }
 0x126   : > { %v293_v41 = vpop.permute.xlu0 %292  ;;  %v416_v42 = vpop.permute.xlu1 %415 }
 0x12a   : > { %v281_v43 = vpop.permute.xlu0 %280  ;;  %v424_v44 = vpop.permute.xlu1 %423 }
 0x12b   : > { %v298_v49 = vsel %vm294_vm3, %v279_v38, %v281_v43 }
 0x12e   : > { %v289_v45 = vpop.permute.xlu0 %288  ;;  %v283_v46 = vpop.permute.xlu1 %282 }
 0x12f   : > { %v299_v47 = vsel %vm294_vm3, %v281_v43, %v283_v46  ;;  %v300_v48 = vsel %vm294_vm3, %v283_v46, %v285_v39  ;;  %v301_v54 = vsel %vm294_vm3, %v287_v40, %v289_v45 }
 0x130   : > { %319 = vmatprep.subr.bf16.mxu0 %v299_v47  ;;  %872 = vmatpush3.bf16.msra.mxu1 %v300_v48 }
 0x131   : > { %320 = vmatpush1.bf16.msra.mxu0 %v298_v49  ;;  %873 = vmatprep.subr.bf16.mxu1 %v1091_v5 }
 0x132   : > { %v414_v50 = vpop.permute.xlu0 %413  ;;  %v291_v51 = vpop.permute.xlu1 %290 }
 0x133   : > { %v302_v52 = vsel %vm294_vm3, %v289_v45, %v291_v51  ;;  %v303_v53 = vsel %vm294_vm3, %v291_v51, %v293_v41  ;;  %v431_v62 = vsel %vm425_vm4, %v414_v50, %v416_v42 }
 0x134   : > { %321 = vmatprep.subr.bf16.mxu0 %v302_v52  ;;  %874 = vmatpush3.bf16.msra.mxu1 %v303_v53 }
 0x135   : > { %322 = vmatpush1.bf16.msra.mxu0 %v301_v54  ;;  %879 = vmatprep.subr.bf16.mxu1 %v1091_v5 }
 0x136   : > { %v410_v56 = vpop.permute.xlu0 %409  ;;  %v532_v57 = vpop.permute.xlu1 %531  ;;  %447 = vmatprep.subr.bf16.mxu0 %v427_v55 }
 0x137   : > { %876 = vmatmul.mubr.msk.bf16.vlgmr.msra.gmra.mrb[0].mxu1 %vm313_vm5, %v269_v34  ;;  %v538_v11 = vsel %vm537_vm6, %v532_v57, %v1319_v36  ;;  %v695_v36 = vsub.s32 1, %v690_v33 }
 0x138   : > { %839 = vmatmul.mubr.msk.bf16.vlgmr.msra.gmra.mrb[0].mxu0 %vm313_vm5, %v269_v34  ;;  %880 = vmatpush3.bf16.msra.mxu1 %v428_v58  ;;  %v691_v34 = vsub.s32 0, %v690_v33 }
 0x139   : > { %448 = vmatpush1.bf16.msra.mxu0 %v426_v59  ;;  %881 = vmatprep.subr.bf16.mxu1 %v1091_v5  ;;  %v696_v42 = vrot.slane %v687_v35, %v695_v36 }
 0x13a   : > { %v422_v60 = vpop.permute.xlu0 %421  ;;  %v412_v61 = vpop.permute.xlu1 %411  ;;  %885 = vmatprep.mubr.msk.bf16.mxu1 %vm1092_vm1, %v1091_v5  ;;  %479 = vmatprep.mubr.bf16.mxu0 %v1093_v15  ;;  %v692_v38 = vrot.slane %v687_v35, %v691_v34 }
 0x13b   : > { %v429_v63 = vsel %vm425_vm4, %v410_v56, %v412_v61  ;;  %v430_v0 = vsel %vm425_vm4, %v412_v61, %v414_v50  ;;  %v434_v3 = vsel %vm425_vm4, %v422_v60, %v424_v44 }
 0x13c   : > { %449 = vmatprep.subr.bf16.mxu0 %v430_v0  ;;  %882 = vmatpush3.bf16.msra.mxu1 %v431_v62 }
 0x13d   : > { %450 = vmatpush1.bf16.msra.mxu0 %v429_v63  ;;  %883 = vmatprep.subr.bf16.mxu1 %v1091_v5 }
 0x13e   : > { %v418_v1 = vpop.permute.xlu0 %417  ;;  %v420_v2 = vpop.permute.xlu1 %419 }
 0x13f   : > { %v432_v6 = vsel %vm425_vm4, %v418_v1, %v420_v2  ;;  %v433_v7 = vsel %vm425_vm4, %v420_v2, %v422_v60 }
 0x140   : > { %451 = vmatprep.subr.bf16.mxu0 %v433_v7  ;;  %884 = vmatpush3.bf16.msra.mxu1 %v434_v3 }
 0x141   : > { %452 = vmatpush1.bf16.msra.mxu0 %v432_v6  ;;  %889 = vmatprep.subr.bf16.mxu1 %v1091_v5 }
 0x142   : > { %v546_v9 = vpop.permute.xlu0 %545  ;;  %v548_v10 = vpop.permute.xlu1 %547  ;;  %579 = vmatprep.subr.bf16.mxu0 %v539_v8 }
 0x143   : > { %886 = vmatmul.mubr.msk.bf16.vlgmr.msra.gmra.mrb[4].mxu1 %vm313_vm5, %v1257_v4  ;;  %v551_v12 = vsel %vm549_vm7, %v546_v9, %v548_v10 }
 0x144   : > { %841 = vmatmul.mubr.msk.bf16.vlgmr.msra.gmra.mrb[0].mxu0 %vm313_vm5, %v1257_v4  ;;  %890 = vmatpush3.bf16.msra.mxu1 %v1321_v37  ;;  %v699_v37 = vsub.s32 2, %v690_v33 }
 0x145   : > { %580 = vmatpush1.bf16.msra.mxu0 %v538_v11  ;;  %891 = vmatprep.subr.bf16.mxu1 %v1091_v5 }
 0x146   : > { %v544_v13 = vpop.permute.xlu0 %543  ;;  %v558_v14 = vpop.permute.xlu1 %557  ;;  %581 = vmatprep.subr.bf16.mxu0 %v551_v12  ;;  %611 = vmatprep.mubr.bf16.mxu0 %v1093_v15  ;;  %v700_v44 = vrot.slane %v687_v35, %v699_v37 }
 0x147   : > { %v550_v16 = vsel %vm549_vm7, %v544_v13, %v546_v9  ;;  %895 = vmatprep.mubr.msk.bf16.mxu1 %vm1092_vm1, %v1091_v5 }
 0x148   : > { %892 = vmatpush3.bf16.msra.mxu1 %v548_v10 }
 0x149   : > { %582 = vmatpush1.bf16.msra.mxu0 %v550_v16  ;;  %893 = vmatprep.subr.bf16.mxu1 %v1091_v5 }
 0x14a   : > { %v560_v17 = vpop.permute.xlu0 %559  ;;  %v556_v4 = vpop.permute.xlu1 %555 }
 0x14b   : > { %v563_v18 = vsel %vm561_vm8, %v558_v14, %v560_v17  ;;  %v562_v19 = vsel %vm561_vm8, %v556_v4, %v558_v14 }
 0x14c   : > { %583 = vmatprep.subr.bf16.mxu0 %v563_v18  ;;  %894 = vmatpush3.bf16.msra.mxu1 %v560_v17 }
 0x14d   : > { %584 = vmatpush1.bf16.msra.mxu0 %v562_v19 }
 0x14e   : > { %v571_v20 = vpop.permute.xlu0 %570  ;;  %v573_v21 = vpop.permute.xlu1 %572 }
 0x14f   : > { %v575_v22 = vsel %vm574_vm9, %v571_v20, %v573_v21 }
 0x150   : > { %844 = vmatmul.mubr.msk.bf16.vlgmr.msra.gmra.mrb[0].mxu0 %vm313_vm5, %v575_v22  ;;  %896 = vmatmul.mubr.msk.bf16.vlgmr.msra.gmra.mrb[8].mxu1 %vm313_vm5, %v575_v22 }
 0x15f   : > { %v674_v15 = vpop.permute.xlu0 %673  ;;  %v679_v39 = vpop.permute.xlu1 %678 }
 0x20a   : > { %v394_v5 = vpop.f32.mrb[0].mxu1 }
 0x20b   : > { %v877_v23 = vpop.f32.mrb[1].mxu1 }
 0x20c   : > { %v397_v24 = vpop.f32.mrb[2].mxu1 }
 0x20d   : > { %v878_v25 = vpop.f32.mrb[3].mxu1 }
 0x216   : > { %v524_v26 = vpop.f32.mrb[4].mxu1 }
 0x217   : > { %v525_v28 = vadd.f32 %v524_v26, %v394_v5  ;;  %v887_v29 = vpop.f32.mrb[5].mxu1 }
 0x218   : > { %v527_v30 = vpop.f32.mrb[6].mxu1 }
 0x219   : > { %v528_v31 = vadd.f32 %v527_v30, %v397_v24  ;;  %v888_v32 = vpop.f32.mrb[7].mxu1 }
 0x223   : > { %v613_v40 = vpop.f32.mrb[0].mxu0  ;;  %v656_v41 = vpop.f32.mrb[8].mxu1 }
 0x224   : > { %v665_v43 = vadd.f32 %v656_v41, %v525_v28  ;;  %v681_v45 = vadd.f32 %v674_v15, %v613_v40  ;;  %v615_v46 = vpop.f32.mrb[1].mxu0  ;;  %v897_v47 = vpop.f32.mrb[9].mxu1 }
 0x225   : > { %v682_v48 = vadd.f32 %v674_v15, %v615_v46  ;;  %v617_v49 = vpop.f32.mrb[2].mxu0  ;;  %v659_v50 = vpop.f32.mrb[10].mxu1 }
 0x226   : > { %v683_v51 = vadd.f32 %v674_v15, %v665_v43  ;;  %v704_v52 = vmul.f32 %v692_v38, %v681_v45  ;;  %v684_v53 = vadd.f32 %v679_v39, %v617_v49  ;;  %v668_v54 = vadd.f32 %v659_v50, %v528_v31  ;;  %v619_v55 = vpop.f32.mrb[3].mxu0  ;;  %v898_v56 = vpop.f32.mrb[11].mxu1 }
 0x227   : > { %v705_v57 = vmul.f32 %v696_v42, %v682_v48  ;;  %v685_v58 = vadd.f32 %v679_v39, %v619_v55 }
 0x228   : > { %v706_v59 = vmul.f32 %v700_v44, %v683_v51  ;;  %v707_v60 = vmul.f32 %v692_v38, %v684_v53  ;;  %v686_v61 = vadd.f32 %v679_v39, %v668_v54 }
 0x229   : > { %v853_v62 = vpack.c.bf16 %v705_v57, %v704_v52  ;;  %v708_v63 = vmul.f32 %v696_v42, %v685_v58 }
 0x22a   : > { %v854_v0 = vpack.c.bf16 %v706_v59, %v706_v59  ;;  %v709_v1 = vmul.f32 %v700_v44, %v686_v61 }
 0x22b   : > { %737 = vst [vmem:[%s1365_s25 + $0x4] sm:$0xff] %v853_v62  ;;  %v855_v2 = vpack.c.bf16 %v708_v63, %v707_v60 }
 0x22c   : > { %739 = vst.msk [vmem:[%s1365_s25 + $0xc] sm:$0xf] %vm738_vm13, %v854_v0  ;;  %v856_v3 = vpack.c.bf16 %v709_v1, %v709_v1 }
 0x22d   : > { %740 = vst [vmem:[%s1365_s25 + $0x18] sm:$0xff] %v855_v2 }
 0x22e   : > { %741 = vst.msk [vmem:[%s1365_s25 + $0x20] sm:$0xf] %vm738_vm13, %v856_v3 }
 0x22f   : > { %1027 = shalt.err (!%p1024_p2)
}
 0x230   : > { %s1028_s14 = scalar_lea.hbm %s1384_s29, 640  ;;  %s1032_s8 = scalar_lea.hbm %s1437_s4, 1280 }
 0x231   : > { %p1029_p4 = scmp.ne.s32.totalorder %s1384_s29, %s1028_s14  ;;  %p1033_p9 = scmp.lt.u32.totalorder %s1384_s29, %s1437_s4 }
 0x232   : > { %p1034_p1 = scmp.lt.u32.totalorder %s1032_s8, %s1028_s14  ;;  %p1036_p6 = scmp.lt.u32.totalorder %s1028_s14, %s1384_s29 }
 0x233   : > { %p1030_p5 = pnand %p1029_p4, %p1443_p11 }
 0x234   : > { %p1035_p3 = por %p1034_p1, %p1033_p9 }
 0x235   : > { %p1031_p7 = pneg %p1030_p5 }
 0x236   : > { %p1037_p12 = por %p1036_p6, %p1035_p3 }
 0x238   : > { %p1038_p13 = pnand %p1037_p12, %p1031_p7 }
 0x23a   : > { %1041 = shalt.err (!%p1038_p13)
}
 0x23b   : > { %s1098_s10 = smov 320   ;;  %s1099_s11 = smov 20  }
 0x23c   : > { %913 = dma.vmem_to_hbm [thread:$0]  (%p1443_p11), %s1386_s22, 640, %s1384_s29, %s743_s19, %s1098_s10, %s1098_s10, %s1099_s11  }
 0x23d PF: > { %s771_s23 = sand.u32 1, %s1068_s15   ;;  %p1444_p8 = scmp.ne.s32.totalorder %s1441_s27, 0 }
 0x23e   : > { %p1445_p10 = scmp.ge.s32.totalorder %s1080_s18, 2  ;;  %s772_s28 = scalar_lea.sflag [#allocation4], %s771_s23 }
 0x240   : > { %p920_p0 = pnand %p1445_p10, %p1444_p8 }
 0x242   : > { %1063 = dma.done.wait (!%p920_p0), %s772_s28, 640  }
 0x243   : > { %1065 = vsyncadd (!%p920_p0), %s772_s28, 4294966656  ;;  %p17_p2 = scmp.ge.s32.totalorder %s1150_s21, 4   ;;  %s1446_s15 = smov %s1072_s16 }
 0x244   : > { %s1447_s16 = smov %s1076_s17  ;;  %s1448_s17 = smov %s1162_s24 }
 0x245   : > { %s1449_s18 = smov %s1150_s21  ;;  %19 = sbr.rel (!%p17_p2) target bundleno = 5 (0x5), region = 81 }
 0x24c   :  { %777 = vsyncpa [#allocation3], 1 }
 0x24d   :  { %779 = vsyncpa [#allocation3 + $0x1], 1 }
 0x24e   :  { %780 = vsyncpa [#allocation4], 1 }
 0x24f   :  { %782 = vsyncpa [#allocation4 + $0x1], 1 }

</bundles_post_ra>
